<compile_context>
chip_gen: v7x
topology: tpu7x:2x2x1
jax: 0.10.0
libtpu: 0.0.40
codegen_flags: <defaults>
</compile_context>

<pallas_src>
import math

import jax
import jax.numpy as jnp
from jax import lax
from jax.experimental import pallas as pl
from jax.experimental.pallas import tpu as pltpu


# =============================================================================
# Kernel 1: row-tiled fused multi-chunk projection (+ fused per-head LayerNorm)
# =============================================================================

def _make_proj_kernel(num_chunks, ln_flags):
    ln_flags = tuple(ln_flags)
    any_ln = any(ln_flags)
    n_ln = sum(ln_flags)

    def kernel(*refs):
        pos = 0
        x_ref = refs[pos]; pos += 1
        w_refs = refs[pos:pos + num_chunks]; pos += num_chunks
        b_refs = refs[pos:pos + num_chunks]; pos += num_chunks
        if any_ln:
            pm_ref = refs[pos]; bm_ref = refs[pos + 1]; pos += 2
            g_refs = refs[pos:pos + n_ln]; pos += n_ln
            bb_refs = refs[pos:pos + n_ln]; pos += n_ln
        out_refs = refs[pos:pos + num_chunks]

        x = x_ref[...]                           # (tn, din) bf16
        if any_ln:
            pm = pm_ref[...]                     # (dout, H) f32, entries 1/Dh
            bm = bm_ref[...]                     # (H, dout) f32, entries 1
        ln_i = 0
        for j in range(num_chunks):
            # per-chunk matmul: live f32 intermediate stays (tn, dout)
            z = jnp.dot(x, w_refs[j][...], preferred_element_type=jnp.float32)
            z = z + b_refs[j][...]
            if ln_flags[j]:
                # low-rank per-head LayerNorm: per-head mean via (dout, H)
                # matmul, broadcast back via (H, dout) matmul; both tiny and
                # lane-dense (replaces the old (E, E) block-averaging matmuls).
                mu = jnp.dot(jnp.dot(z, pm, preferred_element_type=jnp.float32),
                             bm, preferred_element_type=jnp.float32)
                d = z - mu
                var = jnp.dot(jnp.dot(d * d, pm, preferred_element_type=jnp.float32),
                              bm, preferred_element_type=jnp.float32)
                z = d * lax.rsqrt(var + 1e-5)
                z = z * g_refs[ln_i][...] + bb_refs[ln_i][...]
                ln_i += 1
            out_refs[j][...] = z.astype(out_refs[j].dtype)

    return kernel


def fused_proj(x, w_chunks, b_chunks, *, ln_flags=None, num_heads=None,
               ln_gammas=None, ln_betas=None, out_dtype=jnp.bfloat16,
               row_tile=256):
    """y_j = x @ w_j + b_j for each chunk j (all chunks same output width);
    chunks flagged in ln_flags get a per-head LayerNorm(head_dim) fused in.
    x: (n, din); returns a tuple of (n, dout) arrays."""
    n, din = x.shape
    num_chunks = len(w_chunks)
    dout = w_chunks[0].shape[1]
    if ln_flags is None:
        ln_flags = (False,) * num_chunks
    ln_flags = tuple(bool(f) for f in ln_flags)
    any_ln = any(ln_flags)
    f32 = jnp.float32

    # Row tile of 256 keeps double-buffered tiles well inside v7x's 64 MiB VMEM
    # even for realistic embed dims; row count is padded so any n works.
    tn = n if n <= row_tile else row_tile
    n_pad = -(-n // tn) * tn
    if n_pad != n:
        x = jnp.pad(x, ((0, n_pad - n), (0, 0)))

    inputs = [x]
    in_specs = [pl.BlockSpec((tn, din), lambda i: (i, 0))]
    for w in w_chunks:
        inputs.append(jnp.asarray(w).astype(jnp.bfloat16))
        in_specs.append(pl.BlockSpec((din, dout), lambda i: (0, 0)))
    for b in b_chunks:
        inputs.append(jnp.asarray(b, f32).reshape(1, dout))
        in_specs.append(pl.BlockSpec((1, dout), lambda i: (0, 0)))
    if any_ln:
        H = num_heads
        Dh = dout // H
        pm = jnp.repeat(jnp.eye(H, dtype=f32), Dh, axis=0) / Dh   # (dout, H)
        bm = jnp.repeat(jnp.eye(H, dtype=f32), Dh, axis=1)        # (H, dout)
        inputs += [pm, bm]
        in_specs += [pl.BlockSpec((dout, H), lambda i: (0, 0)),
                     pl.BlockSpec((H, dout), lambda i: (0, 0))]
        for g in ln_gammas:
            inputs.append(jnp.asarray(g, f32).reshape(1, dout))
            in_specs.append(pl.BlockSpec((1, dout), lambda i: (0, 0)))
        for be in ln_betas:
            inputs.append(jnp.asarray(be, f32).reshape(1, dout))
            in_specs.append(pl.BlockSpec((1, dout), lambda i: (0, 0)))

    kernel = _make_proj_kernel(num_chunks, ln_flags)
    out_shape = tuple(jax.ShapeDtypeStruct((n_pad, dout), out_dtype)
                      for _ in range(num_chunks))
    out_specs = tuple(pl.BlockSpec((tn, dout), lambda i: (i, 0))
                      for _ in range(num_chunks))
    outs = pl.pallas_call(
        kernel,
        grid=(n_pad // tn,),
        in_specs=in_specs,
        out_specs=out_specs,
        out_shape=out_shape,
        compiler_params=pltpu.CompilerParams(dimension_semantics=("parallel",)),
    )(*inputs)
    if not isinstance(outs, (list, tuple)):
        outs = (outs,)
    if n_pad != n:
        outs = tuple(o[:n] for o in outs)
    return tuple(outs)


# =============================================================================
# Kernel 2: flash-style fused RPE attention (online softmax over Lk tiles,
# optional extra summary-KV block folded in at the last Lk step, no HBM bias)
# =============================================================================

def _make_rpe_attn_kernel(num_heads, head_dim, rel_sizes, has_sum_kv):
    n_total = sum(rel_sizes)
    dn = (((1,), (1,)), ((), ()))   # contract last dims: 'qd,kd->qk'
    Dh = head_dim

    def kernel(*refs):
        if has_sum_kv:
            (q_ref, sk_ref, sv_ref, k_ref, v_ref, r_ref, idx_ref, o_ref,
             m_ref, l_ref, acc_ref) = refs
        else:
            (q_ref, k_ref, v_ref, r_ref, idx_ref, o_ref,
             m_ref, l_ref, acc_ref) = refs

        ki = pl.program_id(2)
        nk = pl.num_programs(2)

        @pl.when(ki == 0)
        def _init():
            m_ref[...] = jnp.full_like(m_ref, -1e30)
            l_ref[...] = jnp.zeros_like(l_ref)
            acc_ref[...] = jnp.zeros_like(acc_ref)

        q = q_ref[0]                    # (tq, E) bf16, pre-scaled by head_dim**-0.5
        k = k_ref[0]                    # (tk, E) bf16
        v = v_ref[0]                    # (tk, E) bf16
        r = r_ref[...]                  # (n_total, E) bf16
        m_prev = m_ref[...]             # (tq, E) f32, per-head stats broadcast over Dh lanes
        l_prev = l_ref[...]
        acc_prev = acc_ref[...]
        tq = q.shape[0]

        # Head-invariant one-hot RPE masks: built once per grid step from the
        # int8 index tile (widened to f32 for exact small-integer compares).
        masks = []
        for i, n_i in enumerate(rel_sizes):
            idx_i = idx_ref[i].astype(jnp.float32)      # (tq, tk)
            for n in range(n_i):
                masks.append(jnp.where(idx_i == float(n), 1.0, 0.0))

        m_cols, l_cols, acc_cols, head_state = [], [], [], []
        for h in range(num_heads):
            cs = slice(h * Dh, (h + 1) * Dh)
            qh, kh, vh, rh = q[:, cs], k[:, cs], v[:, cs], r[:, cs]

            s = lax.dot_general(qh, kh, dn, preferred_element_type=jnp.float32)
            qr = lax.dot_general(qh, rh, dn, preferred_element_type=jnp.float32)
            # fused RPE bias: s[q,k] += qr[q, idx_i[q,k]] per relation
            for n in range(n_total):
                s = s + masks[n] * qr[:, n:n + 1]

            m_prev_h = m_prev[:, h * Dh:h * Dh + 1]
            l_prev_h = l_prev[:, h * Dh:h * Dh + 1]
            m_h = jnp.maximum(m_prev_h, jnp.max(s, axis=-1, keepdims=True))
            alpha = jnp.exp(m_prev_h - m_h)
            p = jnp.exp(s - m_h)
            l_h = alpha * l_prev_h + jnp.sum(p, axis=-1, keepdims=True)
            pv = jnp.dot(p.astype(vh.dtype), vh, preferred_element_type=jnp.float32)
            acc_h = alpha * acc_prev[:, cs] + pv

            m_cols.append(jnp.broadcast_to(m_h, (tq, Dh)))
            l_cols.append(jnp.broadcast_to(l_h, (tq, Dh)))
            acc_cols.append(acc_h)
            head_state.append((qh, m_h, l_h, acc_h))

        # single lane-dense scratch update per grid step
        m_ref[...] = jnp.concatenate(m_cols, axis=-1)
        l_ref[...] = jnp.concatenate(l_cols, axis=-1)
        acc_ref[...] = jnp.concatenate(acc_cols, axis=-1)

        @pl.when(ki == nk - 1)
        def _finalize():
            if has_sum_kv:
                sk = sk_ref[0]          # (Ls, E) bf16 (no RPE bias on this block)
                sv = sv_ref[0]
            out_cols = []
            for h in range(num_heads):
                qh, m_h, l_h, acc_h = head_state[h]
                if has_sum_kv:
                    cs = slice(h * Dh, (h + 1) * Dh)
                    skh, svh = sk[:, cs], sv[:, cs]
                    s_sum = lax.dot_general(qh, skh, dn,
                                            preferred_element_type=jnp.float32)
                    m_fin = jnp.maximum(m_h, jnp.max(s_sum, axis=-1, keepdims=True))
                    beta = jnp.exp(m_h - m_fin)
                    p_sum = jnp.exp(s_sum - m_fin)
                    l_fin = beta * l_h + jnp.sum(p_sum, axis=-1, keepdims=True)
                    acc_fin = beta * acc_h + jnp.dot(
                        p_sum.astype(svh.dtype), svh,
                        preferred_element_type=jnp.float32)
                else:
                    l_fin, acc_fin = l_h, acc_h
                out_cols.append(acc_fin / l_fin)
            # one lane-dense store of the whole (tq, E) output tile
            o_ref[0] = jnp.concatenate(out_cols, axis=-1).astype(o_ref.dtype)

    return kernel


def _pick_tile(length, pref):
    if length <= pref:
        return length
    for t in (pref, 256, 128):
        if t <= length and length % t == 0:
            return t
    return length


def rpe_attention(q, k, v, r_all, idx, rel_sizes, num_heads,
                  sum_k=None, sum_v=None, q_tile=256, k_tile=256):
    """q:(B,Lq,E) pre-scaled, k/v:(B,Lk,E), r_all:(n_total,E) bf16,
    idx:(R,Lq,Lk) int8.  Optional summary block sum_k/sum_v:(B,Ls,E), attended
    without RPE bias.  Returns (B,Lq,E) bf16."""
    B, Lq, E = q.shape
    Lk = k.shape[1]
    Dh = E // num_heads
    n_total = r_all.shape[0]
    R = idx.shape[0]
    has_sum = sum_k is not None

    # 256-multiple tiles fill the 2x256x256 MXU on v6e/v7x; small lengths fall
    # back to full extent.
    tq = _pick_tile(Lq, q_tile)
    tk = _pick_tile(Lk, k_tile)

    kernel = _make_rpe_attn_kernel(num_heads, Dh, tuple(rel_sizes), has_sum)

    inputs = [q]
    in_specs = [pl.BlockSpec((1, tq, E), lambda b, qi, ki: (b, qi, 0))]
    if has_sum:
        Ls = sum_k.shape[1]
        inputs += [sum_k, sum_v]
        in_specs += [pl.BlockSpec((1, Ls, E), lambda b, qi, ki: (b, 0, 0)),
                     pl.BlockSpec((1, Ls, E), lambda b, qi, ki: (b, 0, 0))]
    inputs += [k, v, r_all, idx]
    in_specs += [pl.BlockSpec((1, tk, E), lambda b, qi, ki: (b, ki, 0)),
                 pl.BlockSpec((1, tk, E), lambda b, qi, ki: (b, ki, 0)),
                 pl.BlockSpec((n_total, E), lambda b, qi, ki: (0, 0)),
                 pl.BlockSpec((R, tq, tk), lambda b, qi, ki: (0, qi, ki))]

    return pl.pallas_call(
        kernel,
        grid=(B, Lq // tq, Lk // tk),
        in_specs=in_specs,
        out_specs=pl.BlockSpec((1, tq, E), lambda b, qi, ki: (b, qi, 0)),
        out_shape=jax.ShapeDtypeStruct((B, Lq, E), jnp.bfloat16),
        scratch_shapes=[pltpu.VMEM((tq, E), jnp.float32),   # running max
                        pltpu.VMEM((tq, E), jnp.float32),   # running denom
                        pltpu.VMEM((tq, E), jnp.float32)],  # running acc
        compiler_params=pltpu.CompilerParams(
            dimension_semantics=("parallel", "parallel", "arbitrary")),
    )(*inputs)


# =============================================================================
# Module: parameters + forward
# =============================================================================

def make_params(key, embed_dim, num_heads, max_summary, rel_dims):
    head_dim = embed_dim // num_heads
    keys = jax.random.split(key, 16)
    kiter = iter(keys)

    def xavier(k, fan_in, fan_out, gain=1.0):
        a = gain * math.sqrt(6.0 / (fan_in + fan_out))
        return jax.random.uniform(k, (fan_in, fan_out), jnp.float32, -a, a)

    g = 1.0 / math.sqrt(2.0)
    p = {}
    emb = jax.random.normal(next(kiter), (max_summary + 1, embed_dim), jnp.float32) * 0.02
    p["embed_sum"] = emb.at[0].set(0.0)                     # padding_idx=0
    p["reg_query_w"] = xavier(next(kiter), embed_dim, embed_dim, g)
    p["reg_query_b"] = jnp.zeros((embed_dim,), jnp.float32)
    p["reg_key_w"] = xavier(next(kiter), embed_dim, embed_dim, g)
    p["reg_key_b"] = jnp.zeros((embed_dim,), jnp.float32)
    p["reg_value_w"] = xavier(next(kiter), embed_dim, embed_dim, g)
    p["reg_value_b"] = jnp.zeros((embed_dim,), jnp.float32)
    p["reg_out_w"] = xavier(next(kiter), embed_dim, embed_dim, 1.0)
    p["reg_out_b"] = jnp.zeros((embed_dim,), jnp.float32)
    p["sum_key2_w"] = xavier(next(kiter), head_dim, head_dim, g)
    p["sum_key2_b"] = jnp.zeros((head_dim,), jnp.float32)
    p["sum_value2_w"] = xavier(next(kiter), head_dim, head_dim, g)
    p["sum_value2_b"] = jnp.zeros((head_dim,), jnp.float32)
    for name in ("reg_key_norm", "reg_value_norm", "sum_key2_norm", "sum_value2_norm"):
        p[name + "_g"] = jnp.ones((head_dim,), jnp.float32)
        p[name + "_b"] = jnp.zeros((head_dim,), jnp.float32)
    p["rel_proj_w"] = []
    p["rel_proj_b"] = []
    for rd in rel_dims:
        p["rel_proj_w"].append(xavier(next(kiter), rd, embed_dim, 1.0))
        p["rel_proj_b"].append(jnp.zeros((embed_dim,), jnp.float32))
    return p


def sum_then_reg2_forward(params, reg_x, sum_token_ids, rel_embeddings,
                          rel_indices, sum_len, reg_len, num_heads):
    """Forward pass. reg_x: (reg_len, bsz, embed_dim). Returns ((None, reg_x2), None)."""
    Lr, B, E = reg_x.shape
    H = num_heads
    Dh = E // H
    scaling = Dh ** (-0.5)
    f32, bf16 = jnp.float32, jnp.bfloat16

    # layout: (L, B, E) -> (B, L, E); heads stay packed along the E lanes.
    x_ble = jnp.transpose(reg_x, (1, 0, 2)).astype(bf16)                 # (B, Lr, E)
    x2d = x_ble.reshape(B * Lr, E)

    # --- fused reg Q/K/V projection; head_dim**-0.5 folded into the query
    #     weights, per-head LayerNorm fused into the key/value chunks ---
    reg_q, reg_k, reg_v = fused_proj(
        x2d,
        [params["reg_query_w"] * scaling, params["reg_key_w"], params["reg_value_w"]],
        [params["reg_query_b"] * scaling, params["reg_key_b"], params["reg_value_b"]],
        ln_flags=(False, True, True), num_heads=H,
        ln_gammas=[jnp.tile(params["reg_key_norm_g"], H),
                   jnp.tile(params["reg_value_norm_g"], H)],
        ln_betas=[jnp.tile(params["reg_key_norm_b"], H),
                  jnp.tile(params["reg_value_norm_b"], H)],
        out_dtype=bf16)
    reg_q = reg_q.reshape(B, Lr, E)
    reg_k = reg_k.reshape(B, Lr, E)
    reg_v = reg_v.reshape(B, Lr, E)

    # --- relation projections: parameter-sized, batch-invariant -> plain XLA
    #     (separate pallas launches were pure overhead) ---
    rel_sizes = tuple(int(e.shape[0]) for e in rel_embeddings)
    assert max(rel_sizes) < 128, "int8 relation indices require table sizes < 128"
    r_chunks = [jnp.dot(rel_embeddings[i].astype(f32), params["rel_proj_w"][i])
                + params["rel_proj_b"][i] for i in range(len(rel_embeddings))]
    r_all = jnp.concatenate(r_chunks, axis=0).astype(bf16)               # (n_total, E)

    # --- summary stage ---
    if sum_len > 0:
        # summary queries = pre-scaled embedding lookup (padding_idx 0 row is 0)
        sum_q = (params["embed_sum"][sum_token_ids] * scaling).astype(bf16)   # (B, Ls, E)
        idx_sum = jnp.stack([ri[0] for ri in rel_indices]).astype(jnp.int8)   # (R, Ls, Lr)
        # TODO(synk): attn_mask / summary-token padding masking (FourDimPocket-driven
        # sparse per-bar masks) is not implemented; dense attention is used.
        sum_x2 = rpe_attention(sum_q, reg_k, reg_v, r_all, idx_sum,
                               rel_sizes, H)                                  # (B, Ls, E) bf16

        # second-stage per-head K2/V2 projections as a block-diagonal fused
        # matmul with per-head LayerNorm fused in.
        eyeH = jnp.eye(H, dtype=f32)
        sum_k2, sum_v2 = fused_proj(
            sum_x2.reshape(B * sum_len, E),
            [jnp.kron(eyeH, params["sum_key2_w"]), jnp.kron(eyeH, params["sum_value2_w"])],
            [jnp.tile(params["sum_key2_b"], H), jnp.tile(params["sum_value2_b"], H)],
            ln_flags=(True, True), num_heads=H,
            ln_gammas=[jnp.tile(params["sum_key2_norm_g"], H),
                       jnp.tile(params["sum_value2_norm_g"], H)],
            ln_betas=[jnp.tile(params["sum_key2_norm_b"], H),
                      jnp.tile(params["sum_value2_norm_b"], H)],
            out_dtype=bf16)
        sum_k2 = sum_k2.reshape(B, sum_len, E)
        sum_v2 = sum_v2.reshape(B, sum_len, E)
    else:
        sum_k2 = sum_v2 = None

    # --- regular stage: keys = [sum_k2 ; reg_k], summary block folded into the
    #     online softmax at the last Lk step (no HBM concat) ---
    idx_reg = jnp.stack([ri[1] for ri in rel_indices]).astype(jnp.int8)   # (R, Lr, Lr)
    attn_out = rpe_attention(reg_q, reg_k, reg_v, r_all, idx_reg,
                             rel_sizes, H, sum_k=sum_k2, sum_v=sum_v2)    # (B, Lr, E) bf16

    (reg_x2_2d,) = fused_proj(attn_out.reshape(B * Lr, E),
                              [params["reg_out_w"]],
                              [params["reg_out_b"]],
                              out_dtype=f32)
    reg_x2 = jnp.transpose(reg_x2_2d.reshape(B, Lr, E), (1, 0, 2))        # (Lr, B, E)
    return (None, reg_x2), None


# =============================================================================
# Example run
# =============================================================================

if __name__ == "__main__":
    embed_dim = 64
    num_heads = 4
    max_summary = 8
    sum_len = 8
    reg_len = 16
    bsz = 2
    rel_num_embeddings = [16, 8]
    rel_dims = [32, 16]

    root = jax.random.PRNGKey(0)
    k_par, k_emb0, k_emb1, k_x, k_tok, k_i0s, k_i0r, k_i1s, k_i1r = jax.random.split(root, 9)

    params = make_params(k_par, embed_dim, num_heads, max_summary, rel_dims)

    rel_embeddings = [
        jax.random.normal(k_emb0, (rel_num_embeddings[0], rel_dims[0]), jnp.float32) * 0.02,
        jax.random.normal(k_emb1, (rel_num_embeddings[1], rel_dims[1]), jnp.float32) * 0.02,
    ]

    # reg_x: (reg_len, bsz, embed_dim) — fairseq (T, B, C) layout
    reg_x = jax.random.normal(k_x, (reg_len, bsz, embed_dim), jnp.float32)
    # sum_token_ids: (bsz, sum_len), values in [0, max_summary]; 0 = padding row
    sum_token_ids = jax.random.randint(k_tok, (bsz, sum_len), 0, max_summary + 1)

    # rel_indices[i] = (indices for summary queries (sum_len, reg_len),
    #                   indices for regular queries (reg_len, reg_len))
    rel_indices = [
        (jax.random.randint(k_i0s, (sum_len, reg_len), 0, rel_num_embeddings[0]),
         jax.random.randint(k_i0r, (reg_len, reg_len), 0, rel_num_embeddings[0])),
        (jax.random.randint(k_i1s, (sum_len, reg_len), 0, rel_num_embeddings[1]),
         jax.random.randint(k_i1r, (reg_len, reg_len), 0, rel_num_embeddings[1])),
    ]

    (sum_out, reg_x2), attn_w = sum_then_reg2_forward(
        params, reg_x, sum_token_ids, rel_embeddings, rel_indices,
        sum_len, reg_len, num_heads)

    reg_x2 = jax.block_until_ready(reg_x2)
    assert sum_out is None and attn_w is None
    assert reg_x2.shape == (reg_len, bsz, embed_dim)
    assert reg_x2.dtype == jnp.float32
    assert bool(jnp.all(jnp.isfinite(reg_x2)))
    print("KERNEL_OK")
</pallas_src>

<mosaic_0001>
module attributes {stable_mosaic.version = 11 : i64} {
  func.func @kernel(%arg0: i32, %arg1: memref<32x64xbf16, #tpu.memory_space<vmem>>, %arg2: memref<64x64xbf16, #tpu.memory_space<vmem>>, %arg3: memref<64x64xbf16, #tpu.memory_space<vmem>>, %arg4: memref<64x64xbf16, #tpu.memory_space<vmem>>, %arg5: memref<1x64xf32, #tpu.memory_space<vmem>>, %arg6: memref<1x64xf32, #tpu.memory_space<vmem>>, %arg7: memref<1x64xf32, #tpu.memory_space<vmem>>, %arg8: memref<64x4xf32, #tpu.memory_space<vmem>>, %arg9: memref<4x64xf32, #tpu.memory_space<vmem>>, %arg10: memref<1x64xf32, #tpu.memory_space<vmem>>, %arg11: memref<1x64xf32, #tpu.memory_space<vmem>>, %arg12: memref<1x64xf32, #tpu.memory_space<vmem>>, %arg13: memref<1x64xf32, #tpu.memory_space<vmem>>, %arg14: memref<32x64xbf16, #tpu.memory_space<vmem>>, %arg15: memref<32x64xbf16, #tpu.memory_space<vmem>>, %arg16: memref<32x64xbf16, #tpu.memory_space<vmem>>) attributes {dimension_semantics = [#tpu.dimension_semantics<parallel>], iteration_bounds = array<i64: 1>, scalar_prefetch = 0 : i64, scratch_operands = 0 : i64, tpu.core_type = #tpu.core_type<tc>, window_params = [{transform_indices = @transform_0, window_bounds = array<i64: 32, 64>}, {pipeline_mode = #tpu.pipeline_mode<synchronous>, transform_indices = @transform_1, window_bounds = array<i64: 64, 64>}, {pipeline_mode = #tpu.pipeline_mode<synchronous>, transform_indices = @transform_2, window_bounds = array<i64: 64, 64>}, {pipeline_mode = #tpu.pipeline_mode<synchronous>, transform_indices = @transform_3, window_bounds = array<i64: 64, 64>}, {pipeline_mode = #tpu.pipeline_mode<synchronous>, transform_indices = @transform_4, window_bounds = array<i64: 1, 64>}, {pipeline_mode = #tpu.pipeline_mode<synchronous>, transform_indices = @transform_5, window_bounds = array<i64: 1, 64>}, {pipeline_mode = #tpu.pipeline_mode<synchronous>, transform_indices = @transform_6, window_bounds = array<i64: 1, 64>}, {pipeline_mode = #tpu.pipeline_mode<synchronous>, transform_indices = @transform_7, window_bounds = array<i64: 64, 4>}, {pipeline_mode = #tpu.pipeline_mode<synchronous>, transform_indices = @transform_8, window_bounds = array<i64: 4, 64>}, {pipeline_mode = #tpu.pipeline_mode<synchronous>, transform_indices = @transform_9, window_bounds = array<i64: 1, 64>}, {pipeline_mode = #tpu.pipeline_mode<synchronous>, transform_indices = @transform_10, window_bounds = array<i64: 1, 64>}, {pipeline_mode = #tpu.pipeline_mode<synchronous>, transform_indices = @transform_11, window_bounds = array<i64: 1, 64>}, {pipeline_mode = #tpu.pipeline_mode<synchronous>, transform_indices = @transform_12, window_bounds = array<i64: 1, 64>}, {transform_indices = @transform_13, window_bounds = array<i64: 32, 64>}, {transform_indices = @transform_14, window_bounds = array<i64: 32, 64>}, {transform_indices = @transform_15, window_bounds = array<i64: 32, 64>}]} {
    %c0 = arith.constant 0 : index
    %c0_0 = arith.constant 0 : index
    %0 = vector.load %arg1[%c0, %c0_0] : memref<32x64xbf16, #tpu.memory_space<vmem>>, vector<32x64xbf16>
    %c0_1 = arith.constant 0 : index
    %c0_2 = arith.constant 0 : index
    %1 = vector.load %arg8[%c0_1, %c0_2] : memref<64x4xf32, #tpu.memory_space<vmem>>, vector<64x4xf32>
    %c0_3 = arith.constant 0 : index
    %c0_4 = arith.constant 0 : index
    %2 = vector.load %arg9[%c0_3, %c0_4] : memref<4x64xf32, #tpu.memory_space<vmem>>, vector<4x64xf32>
    %c0_5 = arith.constant 0 : index
    %c0_6 = arith.constant 0 : index
    %3 = vector.load %arg2[%c0_5, %c0_6] : memref<64x64xbf16, #tpu.memory_space<vmem>>, vector<64x64xbf16>
    %cst = arith.constant dense<0.000000e+00> : vector<32x64xf32>
    %4 = tpu.matmul %0, %3, %cst {dimension_numbers = #tpu.dot_dimension_numbers<[1], [0], [0], [1], [0, 0, 1, 1], [], []>} : vector<32x64xbf16>, vector<64x64xbf16>, vector<32x64xf32> -> vector<32x64xf32>
    %c0_7 = arith.constant 0 : index
    %c0_8 = arith.constant 0 : index
    %5 = vector.load %arg5[%c0_7, %c0_8] : memref<1x64xf32, #tpu.memory_space<vmem>>, vector<1x64xf32>
    %6 = vector.broadcast %5 : vector<1x64xf32> to vector<32x64xf32>
    %7 = arith.addf %4, %6 : vector<32x64xf32>
    %8 = arith.truncf %7 : vector<32x64xf32> to vector<32x64xbf16>
    %c0_9 = arith.constant 0 : index
    %c0_10 = arith.constant 0 : index
    %9 = vector.load %arg14[%c0_9, %c0_10] : memref<32x64xbf16, #tpu.memory_space<vmem>>, vector<32x64xbf16>
    tpu.vector_store %arg14[%c0_9, %c0_10], %8 {strides = array<i32>} : memref<32x64xbf16, #tpu.memory_space<vmem>>, vector<32x64xbf16>,
    %c0_11 = arith.constant 0 : index
    %c0_12 = arith.constant 0 : index
    %10 = vector.load %arg3[%c0_11, %c0_12] : memref<64x64xbf16, #tpu.memory_space<vmem>>, vector<64x64xbf16>
    %cst_13 = arith.constant dense<0.000000e+00> : vector<32x64xf32>
    %11 = tpu.matmul %0, %10, %cst_13 {dimension_numbers = #tpu.dot_dimension_numbers<[1], [0], [0], [1], [0, 0, 1, 1], [], []>} : vector<32x64xbf16>, vector<64x64xbf16>, vector<32x64xf32> -> vector<32x64xf32>
    %c0_14 = arith.constant 0 : index
    %c0_15 = arith.constant 0 : index
    %12 = vector.load %arg6[%c0_14, %c0_15] : memref<1x64xf32, #tpu.memory_space<vmem>>, vector<1x64xf32>
    %13 = vector.broadcast %12 : vector<1x64xf32> to vector<32x64xf32>
    %14 = arith.addf %11, %13 : vector<32x64xf32>
    %cst_16 = arith.constant dense<0.000000e+00> : vector<32x4xf32>
    %15 = tpu.matmul %14, %1, %cst_16 {dimension_numbers = #tpu.dot_dimension_numbers<[1], [0], [0], [1], [0, 0, 1, 1], [], []>} : vector<32x64xf32>, vector<64x4xf32>, vector<32x4xf32> -> vector<32x4xf32>
    %cst_17 = arith.constant dense<0.000000e+00> : vector<32x64xf32>
    %16 = tpu.matmul %15, %2, %cst_17 {dimension_numbers = #tpu.dot_dimension_numbers<[1], [0], [0], [1], [0, 0, 1, 1], [], []>} : vector<32x4xf32>, vector<4x64xf32>, vector<32x64xf32> -> vector<32x64xf32>
    %17 = arith.subf %14, %16 : vector<32x64xf32>
    %18 = arith.mulf %17, %17 : vector<32x64xf32>
    %cst_18 = arith.constant dense<0.000000e+00> : vector<32x4xf32>
    %19 = tpu.matmul %18, %1, %cst_18 {dimension_numbers = #tpu.dot_dimension_numbers<[1], [0], [0], [1], [0, 0, 1, 1], [], []>} : vector<32x64xf32>, vector<64x4xf32>, vector<32x4xf32> -> vector<32x4xf32>
    %cst_19 = arith.constant dense<0.000000e+00> : vector<32x64xf32>
    %20 = tpu.matmul %19, %2, %cst_19 {dimension_numbers = #tpu.dot_dimension_numbers<[1], [0], [0], [1], [0, 0, 1, 1], [], []>} : vector<32x4xf32>, vector<4x64xf32>, vector<32x64xf32> -> vector<32x64xf32>
    %cst_20 = arith.constant 9.99999974E-6 : f32
    %21 = vector.broadcast %cst_20 : f32 to vector<32x64xf32>
    %22 = arith.addf %20, %21 : vector<32x64xf32>
    %23 = math.rsqrt %22 : vector<32x64xf32>
    %24 = arith.mulf %17, %23 : vector<32x64xf32>
    %c0_21 = arith.constant 0 : index
    %c0_22 = arith.constant 0 : index
    %25 = vector.load %arg10[%c0_21, %c0_22] : memref<1x64xf32, #tpu.memory_space<vmem>>, vector<1x64xf32>
    %26 = vector.broadcast %25 : vector<1x64xf32> to vector<32x64xf32>
    %27 = arith.mulf %24, %26 : vector<32x64xf32>
    %c0_23 = arith.constant 0 : index
    %c0_24 = arith.constant 0 : index
    %28 = vector.load %arg12[%c0_23, %c0_24] : memref<1x64xf32, #tpu.memory_space<vmem>>, vector<1x64xf32>
    %29 = vector.broadcast %28 : vector<1x64xf32> to vector<32x64xf32>
    %30 = arith.addf %27, %29 : vector<32x64xf32>
    %31 = arith.truncf %30 : vector<32x64xf32> to vector<32x64xbf16>
    %c0_25 = arith.constant 0 : index
    %c0_26 = arith.constant 0 : index
    %32 = vector.load %arg15[%c0_25, %c0_26] : memref<32x64xbf16, #tpu.memory_space<vmem>>, vector<32x64xbf16>
    tpu.vector_store %arg15[%c0_25, %c0_26], %31 {strides = array<i32>} : memref<32x64xbf16, #tpu.memory_space<vmem>>, vector<32x64xbf16>,
    %c0_27 = arith.constant 0 : index
    %c0_28 = arith.constant 0 : index
    %33 = vector.load %arg4[%c0_27, %c0_28] : memref<64x64xbf16, #tpu.memory_space<vmem>>, vector<64x64xbf16>
    %cst_29 = arith.constant dense<0.000000e+00> : vector<32x64xf32>
    %34 = tpu.matmul %0, %33, %cst_29 {dimension_numbers = #tpu.dot_dimension_numbers<[1], [0], [0], [1], [0, 0, 1, 1], [], []>} : vector<32x64xbf16>, vector<64x64xbf16>, vector<32x64xf32> -> vector<32x64xf32>
    %c0_30 = arith.constant 0 : index
    %c0_31 = arith.constant 0 : index
    %35 = vector.load %arg7[%c0_30, %c0_31] : memref<1x64xf32, #tpu.memory_space<vmem>>, vector<1x64xf32>
    %36 = vector.broadcast %35 : vector<1x64xf32> to vector<32x64xf32>
    %37 = arith.addf %34, %36 : vector<32x64xf32>
    %cst_32 = arith.constant dense<0.000000e+00> : vector<32x4xf32>
    %38 = tpu.matmul %37, %1, %cst_32 {dimension_numbers = #tpu.dot_dimension_numbers<[1], [0], [0], [1], [0, 0, 1, 1], [], []>} : vector<32x64xf32>, vector<64x4xf32>, vector<32x4xf32> -> vector<32x4xf32>
    %cst_33 = arith.constant dense<0.000000e+00> : vector<32x64xf32>
    %39 = tpu.matmul %38, %2, %cst_33 {dimension_numbers = #tpu.dot_dimension_numbers<[1], [0], [0], [1], [0, 0, 1, 1], [], []>} : vector<32x4xf32>, vector<4x64xf32>, vector<32x64xf32> -> vector<32x64xf32>
    %40 = arith.subf %37, %39 : vector<32x64xf32>
    %41 = arith.mulf %40, %40 : vector<32x64xf32>
    %cst_34 = arith.constant dense<0.000000e+00> : vector<32x4xf32>
    %42 = tpu.matmul %41, %1, %cst_34 {dimension_numbers = #tpu.dot_dimension_numbers<[1], [0], [0], [1], [0, 0, 1, 1], [], []>} : vector<32x64xf32>, vector<64x4xf32>, vector<32x4xf32> -> vector<32x4xf32>
    %cst_35 = arith.constant dense<0.000000e+00> : vector<32x64xf32>
    %43 = tpu.matmul %42, %2, %cst_35 {dimension_numbers = #tpu.dot_dimension_numbers<[1], [0], [0], [1], [0, 0, 1, 1], [], []>} : vector<32x4xf32>, vector<4x64xf32>, vector<32x64xf32> -> vector<32x64xf32>
    %cst_36 = arith.constant 9.99999974E-6 : f32
    %44 = vector.broadcast %cst_36 : f32 to vector<32x64xf32>
    %45 = arith.addf %43, %44 : vector<32x64xf32>
    %46 = math.rsqrt %45 : vector<32x64xf32>
    %47 = arith.mulf %40, %46 : vector<32x64xf32>
    %c0_37 = arith.constant 0 : index
    %c0_38 = arith.constant 0 : index
    %48 = vector.load %arg11[%c0_37, %c0_38] : memref<1x64xf32, #tpu.memory_space<vmem>>, vector<1x64xf32>
    %49 = vector.broadcast %48 : vector<1x64xf32> to vector<32x64xf32>
    %50 = arith.mulf %47, %49 : vector<32x64xf32>
    %c0_39 = arith.constant 0 : index
    %c0_40 = arith.constant 0 : index
    %51 = vector.load %arg13[%c0_39, %c0_40] : memref<1x64xf32, #tpu.memory_space<vmem>>, vector<1x64xf32>
    %52 = vector.broadcast %51 : vector<1x64xf32> to vector<32x64xf32>
    %53 = arith.addf %50, %52 : vector<32x64xf32>
    %54 = arith.truncf %53 : vector<32x64xf32> to vector<32x64xbf16>
    %c0_41 = arith.constant 0 : index
    %c0_42 = arith.constant 0 : index
    %55 = vector.load %arg16[%c0_41, %c0_42] : memref<32x64xbf16, #tpu.memory_space<vmem>>, vector<32x64xbf16>
    tpu.vector_store %arg16[%c0_41, %c0_42], %54 {strides = array<i32>} : memref<32x64xbf16, #tpu.memory_space<vmem>>, vector<32x64xbf16>,
    return
  }
  func.func @transform_0(%arg0: i32) -> (i32, i32) {
    %c0_i32 = arith.constant 0 : i32
    %c0_i32_0 = arith.constant 0 : i32
    return %arg0, %c0_i32 : i32, i32
  }
  func.func @transform_1(%arg0: i32) -> (i32, i32) {
    %c0_i32 = arith.constant 0 : i32
    %c0_i32_0 = arith.constant 0 : i32
    %c0_i32_1 = arith.constant 0 : i32
    return %c0_i32, %c0_i32_0 : i32, i32
  }
  func.func @transform_2(%arg0: i32) -> (i32, i32) {
    %c0_i32 = arith.constant 0 : i32
    %c0_i32_0 = arith.constant 0 : i32
    %c0_i32_1 = arith.constant 0 : i32
    return %c0_i32, %c0_i32_0 : i32, i32
  }
  func.func @transform_3(%arg0: i32) -> (i32, i32) {
    %c0_i32 = arith.constant 0 : i32
    %c0_i32_0 = arith.constant 0 : i32
    %c0_i32_1 = arith.constant 0 : i32
    return %c0_i32, %c0_i32_0 : i32, i32
  }
  func.func @transform_4(%arg0: i32) -> (i32, i32) {
    %c0_i32 = arith.constant 0 : i32
    %c0_i32_0 = arith.constant 0 : i32
    %c0_i32_1 = arith.constant 0 : i32
    return %c0_i32, %c0_i32_0 : i32, i32
  }
  func.func @transform_5(%arg0: i32) -> (i32, i32) {
    %c0_i32 = arith.constant 0 : i32
    %c0_i32_0 = arith.constant 0 : i32
    %c0_i32_1 = arith.constant 0 : i32
    return %c0_i32, %c0_i32_0 : i32, i32
  }
  func.func @transform_6(%arg0: i32) -> (i32, i32) {
    %c0_i32 = arith.constant 0 : i32
    %c0_i32_0 = arith.constant 0 : i32
    %c0_i32_1 = arith.constant 0 : i32
    return %c0_i32, %c0_i32_0 : i32, i32
  }
  func.func @transform_7(%arg0: i32) -> (i32, i32) {
    %c0_i32 = arith.constant 0 : i32
    %c0_i32_0 = arith.constant 0 : i32
    %c0_i32_1 = arith.constant 0 : i32
    return %c0_i32, %c0_i32_0 : i32, i32
  }
  func.func @transform_8(%arg0: i32) -> (i32, i32) {
    %c0_i32 = arith.constant 0 : i32
    %c0_i32_0 = arith.constant 0 : i32
    %c0_i32_1 = arith.constant 0 : i32
    return %c0_i32, %c0_i32_0 : i32, i32
  }
  func.func @transform_9(%arg0: i32) -> (i32, i32) {
    %c0_i32 = arith.constant 0 : i32
    %c0_i32_0 = arith.constant 0 : i32
    %c0_i32_1 = arith.constant 0 : i32
    return %c0_i32, %c0_i32_0 : i32, i32
  }
  func.func @transform_10(%arg0: i32) -> (i32, i32) {
    %c0_i32 = arith.constant 0 : i32
    %c0_i32_0 = arith.constant 0 : i32
    %c0_i32_1 = arith.constant 0 : i32
    return %c0_i32, %c0_i32_0 : i32, i32
  }
  func.func @transform_11(%arg0: i32) -> (i32, i32) {
    %c0_i32 = arith.constant 0 : i32
    %c0_i32_0 = arith.constant 0 : i32
    %c0_i32_1 = arith.constant 0 : i32
    return %c0_i32, %c0_i32_0 : i32, i32
  }
  func.func @transform_12(%arg0: i32) -> (i32, i32) {
    %c0_i32 = arith.constant 0 : i32
    %c0_i32_0 = arith.constant 0 : i32
    %c0_i32_1 = arith.constant 0 : i32
    return %c0_i32, %c0_i32_0 : i32, i32
  }
  func.func @transform_13(%arg0: i32) -> (i32, i32) {
    %c0_i32 = arith.constant 0 : i32
    %c0_i32_0 = arith.constant 0 : i32
    return %arg0, %c0_i32 : i32, i32
  }
  func.func @transform_14(%arg0: i32) -> (i32, i32) {
    %c0_i32 = arith.constant 0 : i32
    %c0_i32_0 = arith.constant 0 : i32
    return %arg0, %c0_i32 : i32, i32
  }
  func.func @transform_15(%arg0: i32) -> (i32, i32) {
    %c0_i32 = arith.constant 0 : i32
    %c0_i32_0 = arith.constant 0 : i32
    return %arg0, %c0_i32 : i32, i32
  }
}

</mosaic_0001>

<bundles_post_ra>
// kernel: tpu_custom_call.1
= control target key start
LH: loop header
LB: loop body
LE: loop exit
PB: predicated region body
PF: predicated region fallthrough
CT: control target
= control target key end

     0   :  { %21 = vsyncpa [#allocation3], 0  ;;  %s2274_s0 = inlined_call_operand.hbm [shape: bf16[32,64], index: 0, kind: input, shape index: {}]   ;;  %s2275_s1 = inlined_call_operand.vmem [shape: bf16[64,64], index: 1, kind: input, shape index: {}]   ;;  %s2276_s2 = inlined_call_operand.vmem [shape: bf16[64,64], index: 2, kind: input, shape index: {}]   ;;  %s2277_s3 = inlined_call_operand.hbm [shape: bf16[64,64], index: 3, kind: input, shape index: {}]   ;;  %s2278_s4 = inlined_call_operand.vmem [shape: f32[1,64], index: 4, kind: input, shape index: {}]   ;;  %s2279_s5 = inlined_call_operand.vmem [shape: f32[1,64], index: 5, kind: input, shape index: {}]   ;;  %s2280_s6 = inlined_call_operand.vmem [shape: f32[1,64], index: 6, kind: input, shape index: {}]   ;;  %s2281_s7 = inlined_call_operand.vmem [shape: f32[64,4], index: 7, kind: input, shape index: {}]   ;;  %s2282_s8 = inlined_call_operand.vmem [shape: f32[4,64], index: 8, kind: input, shape index: {}]   ;;  %s2283_s9 = inlined_call_operand.vmem [shape: f32[1,64], index: 9, kind: input, shape index: {}]   ;;  %s2284_s10 = inlined_call_operand.vmem [shape: f32[1,64], index: 10, kind: input, shape index: {}]   ;;  %s2285_s11 = inlined_call_operand.vmem [shape: f32[1,64], index: 11, kind: input, shape index: {}]   ;;  %s2286_s12 = inlined_call_operand.vmem [shape: f32[1,64], index: 12, kind: input, shape index: {}]   ;;  %s2287_s13 = inlined_call_operand.hbm [shape: bf16[32,64], index: 13, kind: output, shape index: {0}]   ;;  %s2288_s14 = inlined_call_operand.hbm [shape: bf16[32,64], index: 14, kind: output, shape index: {1}]   ;;  %s2289_s15 = inlined_call_operand.hbm [shape: bf16[32,64], index: 15, kind: output, shape index: {2}]  }
   0x1   :  { %22 = vsyncpa [#allocation6], 0 }
   0x2   :  { %23 = vsyncpa [#allocation4], 0 }
   0x3   :  { %24 = vsyncpa [#allocation9], 0  ;;  %s1887_s18 = smov [#allocation2]   ;;  %s1769_s22 = scalar_lea.hbm %s2274_s0, 256 }
   0x4   :  { %s30_s19 = sshll.u32 %s1887_s18, 4  ;;  %p1770_p0 = scmp.ne.s32.totalorder %s2274_s0, %s1769_s22  ;;  %s31_s19 = int_to_ptr.vmem [resolvable:$true] %s30_s19 }
   0x5   :  { %p1773_p1 = scmp.lt.u32.totalorder %s1769_s22, %s2274_s0 }
   0x7   :  { %p1775_p2 = pnand %p1773_p1, %p1770_p0 }
   0x9   :  { %1778 = shalt.err (!%p1775_p2)
}
   0xa   :  { %s1779_s27 = scalar_lea.vmem %s31_s19, 256  ;;  %p1784_p4 = scmp.lt.s32.totalorder %s31_s19, %s31_s19 }
   0xb   :  { %p1780_p3 = scmp.ne.s32.totalorder %s31_s19, %s1779_s27  ;;  %p1785_p5 = scmp.lt.s32.totalorder %s1779_s27, %s1779_s27 }
   0xd   :  { %p1786_p6 = por %p1785_p5, %p1784_p4 }
   0xf   :  { %p1787_p7 = pnand %p1786_p6, %p1780_p3 }
  0x11   :  { %1790 = shalt.err (!%p1787_p7)
}
  0x12   :  { %s1888_s28 = smov 64   ;;  %s1889_s29 = smov 4  }
  0x13   :  { %36 = dma.hbm_to_vmem [thread:$0]  %s2274_s0, 256, %s31_s19, [#allocation3], %s1888_s28, %s1888_s28, %s1889_s29  }
  0x14   :  { %s1890_s17 = smov [#allocation5]   ;;  %s1791_s22 = scalar_lea.hbm %s2277_s3, 512 }
  0x15   :  { %s46_s18 = sshll.u32 %s1890_s17, 4  ;;  %p1792_p8 = scmp.ne.s32.totalorder %s2277_s3, %s1791_s22  ;;  %s47_s18 = int_to_ptr.vmem [resolvable:$true] %s46_s18 }
  0x16   :  { %p1795_p9 = scmp.lt.u32.totalorder %s1791_s22, %s2277_s3 }
  0x18   :  { %p1797_p10 = pnand %p1795_p9, %p1792_p8 }
  0x1a   :  { %1800 = shalt.err (!%p1797_p10)
}
  0x1b   :  { %s1801_s27 = scalar_lea.vmem %s47_s18, 512  ;;  %p1806_p12 = scmp.lt.s32.totalorder %s47_s18, %s47_s18 }
  0x1c   :  { %p1802_p11 = scmp.ne.s32.totalorder %s47_s18, %s1801_s27  ;;  %p1807_p13 = scmp.lt.s32.totalorder %s1801_s27, %s1801_s27 }
  0x1e   :  { %p1808_p0 = por %p1807_p13, %p1806_p12 }
  0x20   :  { %p1809_p1 = pnand %p1808_p0, %p1802_p11 }
  0x22   :  { %1812 = shalt.err (!%p1809_p1)
}
  0x23   :  { %52 = dma.hbm_to_vmem [thread:$0]  %s2277_s3, 512, %s47_s18, [#allocation6], %s1888_s28, %s1888_s28, %s1889_s29  }
  0x24   :  { %1879 = dma.done.wait [#allocation3], 256  }
  0x25   :  { %1880 = vsyncadd [#allocation3], 4294967040 }
  0x26   :  { %1881 = dma.done.wait [#allocation6], 512  }
  0x27   :  { %1882 = vsyncadd [#allocation6], 4294966784  ;;  %v1739_v0 = vld [vmem:[%s2276_s2] sm:$0xff]   ;;  %v1740_v1 = vld [vmem:[%s2276_s2 + $0x8] sm:$0xff]   ;;  %vm140_vm0 = vcmask 523264   ;;  %vm415_vm1 = vcmask 1043456  }
  0x28   :  { %1524 = vmatprep.subr.bf16.mxu1 %v1739_v0  ;;  %v1741_v2 = vld [vmem:[%s2276_s2 + $0x10] sm:$0xff]   ;;  %v2013_v3 = vld [vmem:[#allocation2] sm:$0xff]   ;;  %v1746_v5 = vld [vmem:[%s2275_s1 + $0x8] sm:$0xff]   ;;  %vm212_vm2 = vcmask 519168   ;;  %vm402_vm3 = vcmask 31744  }
  0x29   :  { %1525 = vmatpush3.bf16.msra.mxu1 %v1739_v0  ;;  %1532 = vmatprep.mubr.msk.bf16.mxu1 %vm140_vm0, %v2013_v3  ;;  %v1745_v4 = vld [vmem:[%s2275_s1] sm:$0xff]   ;;  %v1742_v6 = vld [vmem:[%s2276_s2 + $0x18] sm:$0xff]   ;;  %v1747_v7 = vld [vmem:[%s2275_s1 + $0x10] sm:$0xff]  }
  0x2a   :  { %1526 = vmatprep.subr.bf16.mxu1 %v1740_v1  ;;  %1520 = vmatprep.mubr.msk.bf16.mxu0 %vm140_vm0, %v2013_v3  ;;  %v2031_v8 = vld [vmem:[#allocation2 + $0x8] sm:$0xff]   ;;  %v1748_v9 = vld [vmem:[%s2275_s1 + $0x18] sm:$0xff]   ;;  %v82_v10 = vld [vmem:[%s2281_s7] sm:$0xff] }
  0x2b   :  { %1512 = vmatprep.subr.bf16.mxu0 %v1745_v4  ;;  %v83_v11 = vld [vmem:[%s2281_s7 + $0x8] sm:$0xff]  ;;  %v84_v13 = vld [vmem:[%s2281_s7 + $0x10] sm:$0xff]  ;;  %v85_v14 = vld [vmem:[%s2281_s7 + $0x18] sm:$0xff] }
  0x2c   :  { %1513 = vmatpush3.bf16.msra.mxu0 %v1745_v4  ;;  %v2044_v12 = vpack.c.bf16 %v83_v11, %v82_v10  ;;  %v2053_v15 = vpack.c.bf16 %v85_v14, %v84_v13  ;;  %v86_v16 = vld [vmem:[%s2281_s7 + $0x20] sm:$0xff]  ;;  %v87_v17 = vld [vmem:[%s2281_s7 + $0x28] sm:$0xff]  ;;  %v88_v19 = vld [vmem:[%s2281_s7 + $0x30] sm:$0xff] }
  0x2d   :  { %1527 = vmatpush3.bf16.msra.mxu1 %v1740_v1  ;;  %1514 = vmatprep.subr.bf16.mxu0 %v1746_v5  ;;  %v2065_v18 = vpack.c.bf16 %v87_v17, %v86_v16  ;;  %v89_v20 = vld [vmem:[%s2281_s7 + $0x38] sm:$0xff]  ;;  %v2083_v22 = vld [vmem:[%s2282_s8] sm:$0xf]  ;;  %v1749_v61 = vld [vmem:[#allocation5] sm:$0xff]  }
  0x2e   :  { %1528 = vmatprep.subr.bf16.mxu1 %v1741_v2  ;;  %v2076_v21 = vpack.c.bf16 %v89_v20, %v88_v19  ;;  %v1352_v23 = vld [vmem:[%s2279_s5] ss:$0 sm:$0xff]  ;;  %v1750_v0 = vld [vmem:[#allocation5 + $0x8] sm:$0xff]  }
  0x2f   :  { %v1339_v30 = vld [vmem:[%s2278_s4] ss:$0 sm:$0xff] }
  0x30   :  { %1515 = vmatpush3.bf16.msra.mxu0 %v1746_v5  ;;  %v1751_v4 = vld [vmem:[#allocation5 + $0x10] sm:$0xff]   ;;  %v1752_v5 = vld [vmem:[#allocation5 + $0x18] sm:$0xff]  }
  0x31   :  { %1529 = vmatpush3.bf16.msra.mxu1 %v1741_v2  ;;  %1516 = vmatprep.subr.bf16.mxu0 %v1747_v7 }
  0x32   :  { %1530 = vmatprep.subr.bf16.mxu1 %v1742_v6 }
  0x34   :  { %1517 = vmatpush3.bf16.msra.mxu0 %v1747_v7 }
  0x35   :  { %1531 = vmatpush3.bf16.msra.mxu1 %v1742_v6  ;;  %1518 = vmatprep.subr.bf16.mxu0 %v1748_v9 }
  0x36   :  { %1558 = vmatprep.subr.msk.mxu1 %vm415_vm1, %v2083_v22 }
  0x38   :  { %1533 = vmatmul.mubr.msk.bf16.vlgmr.msra.gmra.mrb[0].mxu1 %vm140_vm0, %v2031_v8  ;;  %1519 = vmatpush3.bf16.msra.mxu0 %v1748_v9 }
  0x39   :  { %1669 = vmatprep.subr.bf16.mxu0 %v2044_v12  ;;  %1559 = vmatpush3.msk.msra.mxu1 %vm415_vm1, %v2083_v22 }
  0x3a   :  { %1685 = vmatprep.subr.bf16.mxu1 %v2044_v12 }
  0x3b   :  { %1521 = vmatmul.mubr.msk.bf16.vlgmr.msra.gmra.mrb[0].mxu0 %vm140_vm0, %v2031_v8 }
  0x3c   :  { %1671 = vmatpush3.bf16.msra.mxu0 %v2044_v12 }
  0x3d   :  { %1673 = vmatprep.subr.bf16.mxu0 %v2053_v15 }
  0x40   :  { %1675 = vmatpush3.bf16.msra.mxu0 %v2053_v15 }
  0x41   :  { %1677 = vmatprep.subr.bf16.mxu0 %v2065_v18 }
  0x44   :  { %1679 = vmatpush3.bf16.msra.mxu0 %v2065_v18 }
  0x45   :  { %1681 = vmatprep.subr.bf16.mxu0 %v2076_v21 }
  0x48   :  { %1683 = vmatpush3.bf16.msra.mxu0 %v2076_v21 }
  0x49   :  { %1588 = vmatprep.subr.msk.mxu0 %vm415_vm1, %v2083_v22 }
 0x10b   :  { %v1534_v24 = vpop.f32.mrb[0].mxu1 }
 0x10c   :  { %v290_v25 = vpop.f32.mrb[1].mxu1  ;;  %v299_v31 = vadd.f32 %v1534_v24, %v1352_v23  ;;  %v1378_v24 = vld [vmem:[%s2285_s11] ss:$0 sm:$0xff]  ;;  %s1892_s11 = smov [#allocation7]  }
 0x10d   :  { %v291_v26 = vadd.f32 %v1352_v23, %v290_v25  ;;  %v1535_v27 = vpop.f32.mrb[2].mxu1  ;;  %s1295_s3 = sshll.u32 %s1892_s11, 4  ;;  %s1296_s3 = int_to_ptr.vmem [resolvable:$true] %s1295_s3 }
 0x10e   :  { %v293_v28 = vpop.f32.mrb[3].mxu1  ;;  %v1522_v32 = vpop.f32.mrb[0].mxu0  ;;  %v302_v35 = vadd.f32 %v1535_v27, %v1352_v23 }
 0x10f   :  { %v294_v29 = vadd.f32 %v1352_v23, %v293_v28  ;;  %1552 = vmatprep.mubr.msk.f32.mxu0 %vm140_vm0, %v291_v26  ;;  %v190_v33 = vadd.f32 %v1522_v32, %v1339_v30  ;;  %v181_v34 = vpop.f32.mrb[1].mxu0  ;;  %v1383_v23 = vld [vmem:[%s2280_s6] ss:$0 sm:$0xff]  ;;  %s1891_s6 = smov [#allocation8]  }
 0x110   :  { %v182_v36 = vadd.f32 %v1339_v30, %v181_v34  ;;  %v1523_v37 = vpop.f32.mrb[2].mxu0 }
 0x111   :  { %1553 = vmatmul.mubr.msk.f32.vlgmr.msra.gmra.mrb[4].mxu0 %vm140_vm0, %v294_v29  ;;  %v1416_v38 = vpack.c.bf16 %v190_v33, %v190_v33  ;;  %v193_v39 = vadd.f32 %v1523_v37, %v1339_v30  ;;  %v184_v40 = vpop.f32.mrb[3].mxu0 }
 0x112   :  { %1555 = vmatprep.mubr.msk.f32.mxu0 %vm140_vm0, %v299_v31  ;;  %1589 = vmatpush3.msk.msra.mxu0 %vm415_vm1, %v2083_v22  ;;  %v1414_v41 = vpack.c.bf16 %v182_v36, %v182_v36  ;;  %v185_v42 = vadd.f32 %v1339_v30, %v184_v40 }
 0x113   :  { %215 = vst.msk [vmem:[#allocation7 + $0x8] sm:$0xf] %vm212_vm2, %v1416_v38  ;;  %v1417_v43 = vpack.c.bf16 %v193_v39, %v193_v39  ;;  %1596 = vmatprep.subr.bf16.mxu0 %v1749_v61 }
 0x114   :  { %213 = vst.msk [vmem:[#allocation7] sm:$0xf] %vm212_vm2, %v1414_v41  ;;  %v1415_v44 = vpack.c.bf16 %v185_v42, %v185_v42 }
 0x115   :  { %1556 = vmatmul.mubr.msk.f32.gmra.mrb[6].mxu0 %vm140_vm0, %v302_v35  ;;  %216 = vst.msk [vmem:[#allocation7 + $0xc] sm:$0xf] %vm212_vm2, %v1417_v43 }
 0x116   :  { %214 = vst.msk [vmem:[#allocation7 + $0x4] sm:$0xf] %vm212_vm2, %v1415_v44 }
 0x1e4   :  { %v1554_v45 = vpop.f32.mrb[4].mxu0 }
 0x1e5   :  { %v383_v46 = vpop.f32.mrb[5].mxu0 }
 0x1e6   :  { %1560 = vmatprep.mubr.msk.f32.mxu1 %vm402_vm3, %v383_v46 }
 0x1e7   :  { %1561 = vmatmul.mubr.msk.f32.vlgmr.msra.gmra.mrb[4].mxu1 %vm402_vm3, %v1554_v45 }
 0x1e8   :  { %v1557_v47 = vpop.f32.mrb[6].mxu0  ;;  %1687 = vmatpush3.bf16.msra.mxu1 %v2044_v12 }
 0x1e9   :  { %v393_v48 = vpop.f32.mrb[7].mxu0  ;;  %1689 = vmatprep.subr.bf16.mxu1 %v2053_v15 }
 0x1ea   :  { %1563 = vmatprep.mubr.msk.f32.mxu1 %vm402_vm3, %v393_v48 }
 0x1eb   :  { %1564 = vmatmul.mubr.msk.f32.gmra.mrb[6].mxu1 %vm402_vm3, %v1557_v47 }
 0x1ec   :  { %1691 = vmatpush3.bf16.msra.mxu1 %v2053_v15 }
 0x1ed   :  { %1693 = vmatprep.subr.bf16.mxu1 %v2065_v18 }
 0x1f0   :  { %1695 = vmatpush3.bf16.msra.mxu1 %v2065_v18 }
 0x1f1   :  { %1697 = vmatprep.subr.bf16.mxu1 %v2076_v21 }
 0x1f4   :  { %1699 = vmatpush3.bf16.msra.mxu1 %v2076_v21 }
 0x1f5   :  { %1701 = vmatprep.subr.bf16.mxu1 %v2044_v12 }
 0x2ba   :  { %v1562_v49 = vpop.f32.mrb[4].mxu1 }
 0x2bb   :  { %v2120_v50 = vsub.f32 %v294_v29, %v1562_v49  ;;  %v485_v51 = vpop.f32.mrb[5].mxu1 }
 0x2bc   :  { %v504_v52 = vsub.f32 %v291_v26, %v485_v51 }
 0x2bd   :  { %v509_v55 = vmul.f32 %v2120_v50, %v2120_v50 }
 0x2be   :  { %v508_v53 = vmul.f32 %v504_v52, %v504_v52  ;;  %v1565_v54 = vpop.f32.mrb[6].mxu1 }
 0x2bf   :  { %v2124_v56 = vsub.f32 %v302_v35, %v1565_v54  ;;  %v495_v57 = vpop.f32.mrb[7].mxu1 }
 0x2c0   :  { %v2126_v58 = vsub.f32 %v299_v31, %v495_v57  ;;  %1582 = vmatprep.mubr.msk.f32.mxu1 %vm140_vm0, %v508_v53 }
 0x2c1   :  { %1583 = vmatmul.mubr.msk.f32.vlgmr.msra.gmra.mrb[8].mxu1 %vm140_vm0, %v509_v55  ;;  %v511_v60 = vmul.f32 %v2124_v56, %v2124_v56 }
 0x2c2   :  { %v510_v59 = vmul.f32 %v2126_v58, %v2126_v58  ;;  %1703 = vmatpush3.bf16.msra.mxu1 %v2044_v12 }
 0x2c3   :  { %1705 = vmatprep.subr.bf16.mxu1 %v2053_v15 }
 0x2c4   :  { %1585 = vmatprep.mubr.msk.f32.mxu1 %vm140_vm0, %v510_v59 }
 0x2c5   :  { %1586 = vmatmul.mubr.msk.f32.gmra.mrb[10].mxu1 %vm140_vm0, %v511_v60 }
 0x2c6   :  { %1707 = vmatpush3.bf16.msra.mxu1 %v2053_v15 }
 0x2c7   :  { %1709 = vmatprep.subr.bf16.mxu1 %v2065_v18 }
 0x2ca   :  { %1711 = vmatpush3.bf16.msra.mxu1 %v2065_v18 }
 0x2cb   :  { %1713 = vmatprep.subr.bf16.mxu1 %v2076_v21 }
 0x2ce   :  { %1715 = vmatpush3.bf16.msra.mxu1 %v2076_v21 }
 0x2cf   :  { %1717 = vmatprep.subr.bf16.mxu1 %v2044_v12 }
 0x394   :  { %v1584_v62 = vpop.f32.mrb[8].mxu1 }
 0x395   :  { %v590_v63 = vpop.f32.mrb[9].mxu1 }
 0x396   :  { %1590 = vmatprep.mubr.msk.f32.mxu0 %vm402_vm3, %v590_v63 }
 0x397   :  { %1591 = vmatmul.mubr.msk.f32.vlgmr.msra.gmra.mrb[8].mxu0 %vm402_vm3, %v1584_v62 }
 0x398   :  { %1597 = vmatpush3.bf16.msra.mxu0 %v1749_v61  ;;  %v1587_v1 = vpop.f32.mrb[10].mxu1 }
 0x399   :  { %v600_v2 = vpop.f32.mrb[11].mxu1  ;;  %1598 = vmatprep.subr.bf16.mxu0 %v1750_v0 }
 0x39a   :  { %1593 = vmatprep.mubr.msk.f32.mxu0 %vm402_vm3, %v600_v2 }
 0x39b   :  { %1594 = vmatmul.mubr.msk.f32.gmra.mrb[10].mxu0 %vm402_vm3, %v1587_v1 }
 0x39c   :  { %1599 = vmatpush3.bf16.msra.mxu0 %v1750_v0  ;;  %1604 = vmatprep.mubr.msk.bf16.mxu0 %vm140_vm0, %v2013_v3 }
 0x39d   :  { %1600 = vmatprep.subr.bf16.mxu0 %v1751_v4 }
 0x3a0   :  { %1601 = vmatpush3.bf16.msra.mxu0 %v1751_v4 }
 0x3a1   :  { %1602 = vmatprep.subr.bf16.mxu0 %v1752_v5 }
 0x3a4   :  { %1603 = vmatpush3.bf16.msra.mxu0 %v1752_v5 }
 0x3a5   :  { %1630 = vmatprep.subr.msk.mxu0 %vm415_vm1, %v2083_v22 }
 0x3a7   :  { %1605 = vmatmul.mubr.msk.bf16.vlgmr.msra.gmra.mrb[12].mxu0 %vm140_vm0, %v2031_v8  ;;  %v1377_v8 = vld [vmem:[%s2283_s9] ss:$0 sm:$0xff]  ;;  %s1307_s9 = sshll.u32 %s1891_s6, 4  ;;  %s1308_s9 = int_to_ptr.vmem [resolvable:$true] %s1307_s9 }
 0x3a8   :  { %1631 = vmatpush3.msk.msra.mxu0 %vm415_vm1, %v2083_v22  ;;  %s1813_s18 = scalar_lea.vmem %s1308_s9, 256  ;;  %p1818_p3 = scmp.lt.s32.totalorder %s1308_s9, %s1308_s9 }
 0x3a9   :  { %1660 = vmatprep.subr.msk.mxu0 %vm415_vm1, %v2083_v22  ;;  %p1814_p2 = scmp.ne.s32.totalorder %s1308_s9, %s1813_s18  ;;  %p1819_p4 = scmp.lt.s32.totalorder %s1813_s18, %s1813_s18 }
 0x3ab   :  { %p1820_p5 = por %p1819_p4, %p1818_p3 }
 0x3ad   :  { %p1821_p6 = pnand %p1820_p5, %p1814_p2 }
 0x46a   :  { %v1592_v6 = vpop.f32.mrb[8].mxu0 }
 0x46b   :  { %v693_v7 = vadd.f32 1e-05, %v1592_v6  ;;  %v687_v3 = vpop.f32.mrb[9].mxu0 }
 0x46c   :  { %v688_v9 = vadd.f32 1e-05, %v687_v3 }
 0x46d   :  { %1753 = vrsqrt.f32 %v693_v7 }
 0x46e   :  { %1755 = vrsqrt.f32 %v688_v9  ;;  %v1595_v10 = vpop.f32.mrb[10].mxu0 }
 0x46f   :  { %v703_v11 = vadd.f32 1e-05, %v1595_v10  ;;  %v697_v13 = vpop.f32.mrb[11].mxu0 }
 0x470   :  { %v698_v14 = vadd.f32 1e-05, %v697_v13 }
 0x471   :  { %1757 = vrsqrt.f32 %v703_v11 }
 0x472   :  { %1759 = vrsqrt.f32 %v698_v14 }
 0x477   :  { %v1754_v16 = vpop.eup %1753 }
 0x478   :  { %v1756_v17 = vpop.eup %1755  ;;  %v711_v19 = vmul.f32 %v1754_v16, %v2120_v50 }
 0x479   :  { %v710_v20 = vmul.f32 %v1756_v17, %v504_v52 }
 0x47a   :  { %v722_v25 = vmul.f32 %v1377_v8, %v711_v19  ;;  %v1606_v26 = vpop.f32.mrb[12].mxu0 }
 0x47b   :  { %v1758_v27 = vpop.eup %1757  ;;  %v721_v28 = vmul.f32 %v1377_v8, %v710_v20  ;;  %v829_v29 = vpop.f32.mrb[13].mxu0  ;;  %v838_v42 = vadd.f32 %v1606_v26, %v1383_v23 }
 0x47c   :  { %v1760_v30 = vpop.eup %1759  ;;  %v713_v31 = vmul.f32 %v1758_v27, %v2124_v56  ;;  %v830_v32 = vadd.f32 %v1383_v23, %v829_v29  ;;  %v1607_v33 = vpop.f32.mrb[14].mxu0  ;;  %v733_v34 = vadd.f32 %v1378_v24, %v722_v25 }
 0x47d   :  { %v712_v35 = vmul.f32 %v1760_v30, %v2126_v58  ;;  %v832_v36 = vpop.f32.mrb[15].mxu0  ;;  %v732_v37 = vadd.f32 %v1378_v24, %v721_v28  ;;  %v841_v46 = vadd.f32 %v1607_v33, %v1383_v23 }
 0x47e   :  { %v724_v38 = vmul.f32 %v1377_v8, %v713_v31  ;;  %v833_v39 = vadd.f32 %v1383_v23, %v832_v36  ;;  %1624 = vmatprep.mubr.msk.f32.mxu1 %vm140_vm0, %v830_v32  ;;  %v1419_v40 = vpack.c.bf16 %v733_v34, %v733_v34 }
 0x47f   :  { %v723_v41 = vmul.f32 %v1377_v8, %v712_v35  ;;  %v1418_v43 = vpack.c.bf16 %v732_v37, %v732_v37 }
 0x480   :  { %1625 = vmatmul.mubr.msk.f32.vlgmr.msra.gmra.mrb[12].mxu1 %vm140_vm0, %v833_v39  ;;  %v735_v44 = vadd.f32 %v1378_v24, %v724_v38  ;;  %753 = vst.msk [vmem:[#allocation8 + $0x4] sm:$0xf] %vm212_vm2, %v1419_v40 }
 0x481   :  { %1627 = vmatprep.mubr.msk.f32.mxu1 %vm140_vm0, %v838_v42  ;;  %1719 = vmatpush3.bf16.msra.mxu1 %v2044_v12  ;;  %v734_v45 = vadd.f32 %v1378_v24, %v723_v41  ;;  %752 = vst.msk [vmem:[#allocation8] sm:$0xf] %vm212_vm2, %v1418_v43 }
 0x482   :  { %1721 = vmatprep.subr.bf16.mxu1 %v2053_v15  ;;  %v1421_v47 = vpack.c.bf16 %v735_v44, %v735_v44 }
 0x483   :  { %v1420_v48 = vpack.c.bf16 %v734_v45, %v734_v45 }
 0x484   :  { %1628 = vmatmul.mubr.msk.f32.gmra.mrb[14].mxu1 %vm140_vm0, %v841_v46  ;;  %755 = vst.msk [vmem:[#allocation8 + $0xc] sm:$0xf] %vm212_vm2, %v1421_v47 }
 0x485   :  { %1723 = vmatpush3.bf16.msra.mxu1 %v2053_v15  ;;  %754 = vst.msk [vmem:[#allocation8 + $0x8] sm:$0xf] %vm212_vm2, %v1420_v48 }
 0x486   :  { %1725 = vmatprep.subr.bf16.mxu1 %v2065_v18 }
 0x489   :  { %1727 = vmatpush3.bf16.msra.mxu1 %v2065_v18 }
 0x48a   :  { %1729 = vmatprep.subr.bf16.mxu1 %v2076_v21 }
 0x48d   :  { %1731 = vmatpush3.bf16.msra.mxu1 %v2076_v21 }
 0x553   :  { %v1626_v12 = vpop.f32.mrb[12].mxu1 }
 0x554   :  { %v922_v49 = vpop.f32.mrb[13].mxu1 }
 0x555   :  { %1632 = vmatprep.mubr.msk.f32.mxu0 %vm402_vm3, %v922_v49 }
 0x556   :  { %1633 = vmatmul.mubr.msk.f32.vlgmr.msra.gmra.mrb[16].mxu0 %vm402_vm3, %v1626_v12 }
 0x557   :  { %v1629_v50 = vpop.f32.mrb[14].mxu1  ;;  %1661 = vmatpush3.msk.msra.mxu0 %vm415_vm1, %v2083_v22 }
 0x558   :  { %v932_v15 = vpop.f32.mrb[15].mxu1 }
 0x559   :  { %1635 = vmatprep.mubr.msk.f32.mxu0 %vm402_vm3, %v932_v15 }
 0x55a   :  { %1636 = vmatmul.mubr.msk.f32.gmra.mrb[18].mxu0 %vm402_vm3, %v1629_v50 }
 0x629   :  { %v1634_v18 = vpop.f32.mrb[16].mxu0 }
 0x62a   :  { %v2191_v51 = vsub.f32 %v833_v39, %v1634_v18  ;;  %v1019_v52 = vpop.f32.mrb[17].mxu0 }
 0x62b   :  { %v2193_v21 = vsub.f32 %v830_v32, %v1019_v52 }
 0x62c   :  { %v1043_v55 = vmul.f32 %v2191_v51, %v2191_v51 }
 0x62d   :  { %v1042_v53 = vmul.f32 %v2193_v21, %v2193_v21  ;;  %v1637_v54 = vpop.f32.mrb[18].mxu0 }
 0x62e   :  { %v2199_v56 = vsub.f32 %v841_v46, %v1637_v54  ;;  %v1029_v22 = vpop.f32.mrb[19].mxu0 }
 0x62f   :  { %v2201_v57 = vsub.f32 %v838_v42, %v1029_v22  ;;  %1654 = vmatprep.mubr.msk.f32.mxu1 %vm140_vm0, %v1042_v53 }
 0x630   :  { %1655 = vmatmul.mubr.msk.f32.vlgmr.msra.gmra.mrb[16].mxu1 %vm140_vm0, %v1043_v55  ;;  %v1045_v59 = vmul.f32 %v2199_v56, %v2199_v56 }
 0x631   :  { %v1044_v58 = vmul.f32 %v2201_v57, %v2201_v57 }
 0x633   :  { %1657 = vmatprep.mubr.msk.f32.mxu1 %vm140_vm0, %v1044_v58 }
 0x634   :  { %1658 = vmatmul.mubr.msk.f32.gmra.mrb[18].mxu1 %vm140_vm0, %v1045_v59 }
 0x703   :  { %v1656_v60 = vpop.f32.mrb[16].mxu1 }
 0x704   :  { %v1124_v61 = vpop.f32.mrb[17].mxu1 }
 0x705   :  { %1662 = vmatprep.mubr.msk.f32.mxu0 %vm402_vm3, %v1124_v61 }
 0x706   :  { %1663 = vmatmul.mubr.msk.f32.vlgmr.msra.gmra.mrb[20].mxu0 %vm402_vm3, %v1656_v60 }
 0x707   :  { %v1659_v62 = vpop.f32.mrb[18].mxu1 }
 0x708   :  { %v1134_v63 = vpop.f32.mrb[19].mxu1 }
 0x709   :  { %1665 = vmatprep.mubr.msk.f32.mxu0 %vm402_vm3, %v1134_v63 }
 0x70a   :  { %1666 = vmatmul.mubr.msk.f32.gmra.mrb[22].mxu0 %vm402_vm3, %v1659_v62 }
 0x70b   :  { %1824 = shalt.err (!%p1821_p6)
}
 0x70c   :  { %s1825_s25 = scalar_lea.hbm %s2288_s14, 256 }
 0x70d   :  { %p1826_p7 = scmp.ne.s32.totalorder %s2288_s14, %s1825_s25  ;;  %p1829_p8 = scmp.lt.u32.totalorder %s1825_s25, %s2288_s14 }
 0x70f   :  { %p1831_p9 = pnand %p1829_p8, %p1826_p7 }
 0x711   :  { %1834 = shalt.err (!%p1831_p9)
}
 0x712   :  { %1313 = dma.vmem_to_hbm [thread:$0]  %s1308_s9, 256, %s2288_s14, [#allocation9], %s1888_s28, %s1888_s28, %s1889_s29  }
 0x713   :  { %s1835_s7 = scalar_lea.vmem %s1296_s3, 256  ;;  %p1840_p11 = scmp.lt.s32.totalorder %s1296_s3, %s1296_s3 }
 0x714   :  { %p1836_p10 = scmp.ne.s32.totalorder %s1296_s3, %s1835_s7  ;;  %p1841_p12 = scmp.lt.s32.totalorder %s1835_s7, %s1835_s7 }
 0x716   :  { %p1842_p13 = por %p1841_p12, %p1840_p11 }
 0x718   :  { %p1843_p0 = pnand %p1842_p13, %p1836_p10 }
 0x71a   :  { %1846 = shalt.err (!%p1843_p0)
}
 0x71b   :  { %s1847_s17 = scalar_lea.hbm %s2287_s13, 256 }
 0x71c   :  { %p1848_p1 = scmp.ne.s32.totalorder %s2287_s13, %s1847_s17  ;;  %p1851_p2 = scmp.lt.u32.totalorder %s1847_s17, %s2287_s13 }
 0x71e   :  { %p1853_p3 = pnand %p1851_p2, %p1848_p1 }
 0x720   :  { %1856 = shalt.err (!%p1853_p3)
}
 0x721   :  { %1301 = dma.vmem_to_hbm [thread:$0]  %s1296_s3, 256, %s2287_s13, [#allocation4], %s1888_s28, %s1888_s28, %s1889_s29  }
 0x722   :  { %v1408_v10 = vld [vmem:[%s2284_s10] ss:$0 sm:$0xff]  ;;  %s1893_s10 = smov [#allocation10]  }
 0x723   :  { %v1409_v14 = vld [vmem:[%s2286_s12] ss:$0 sm:$0xff]  ;;  %s1319_s12 = sshll.u32 %s1893_s10, 4  ;;  %s1320_s12 = int_to_ptr.vmem [resolvable:$true] %s1319_s12 }
 0x724   :  { %s1857_s11 = scalar_lea.vmem %s1320_s12, 256  ;;  %p1862_p5 = scmp.lt.s32.totalorder %s1320_s12, %s1320_s12 }
 0x725   :  { %p1858_p4 = scmp.ne.s32.totalorder %s1320_s12, %s1857_s11  ;;  %p1863_p6 = scmp.lt.s32.totalorder %s1857_s11, %s1857_s11 }
 0x727   :  { %p1864_p7 = por %p1863_p6, %p1862_p5 }
 0x729   :  { %p1865_p8 = pnand %p1864_p7, %p1858_p4 }
 0x7d9   :  { %v1664_v0 = vpop.f32.mrb[20].mxu0 }
 0x7da   :  { %v1227_v1 = vadd.f32 1e-05, %v1664_v0  ;;  %v1221_v2 = vpop.f32.mrb[21].mxu0 }
 0x7db   :  { %v1222_v4 = vadd.f32 1e-05, %v1221_v2 }
 0x7dc   :  { %1761 = vrsqrt.f32 %v1227_v1 }
 0x7dd   :  { %1763 = vrsqrt.f32 %v1222_v4  ;;  %v1667_v5 = vpop.f32.mrb[22].mxu0 }
 0x7de   :  { %v1237_v6 = vadd.f32 1e-05, %v1667_v5  ;;  %v1231_v7 = vpop.f32.mrb[23].mxu0 }
 0x7df   :  { %v1232_v3 = vadd.f32 1e-05, %v1231_v7 }
 0x7e0   :  { %1765 = vrsqrt.f32 %v1237_v6 }
 0x7e1   :  { %1767 = vrsqrt.f32 %v1232_v3 }
 0x7e6   :  { %v1762_v9 = vpop.eup %1761 }
 0x7e7   :  { %v1764_v11 = vpop.eup %1763  ;;  %v1245_v13 = vmul.f32 %v1762_v9, %v2191_v51 }
 0x7e8   :  { %v1244_v16 = vmul.f32 %v1764_v11, %v2193_v21 }
 0x7e9   :  { %v1256_v8 = vmul.f32 %v1408_v10, %v1245_v13 }
 0x7ea   :  { %v1766_v17 = vpop.eup %1765  ;;  %v1255_v19 = vmul.f32 %v1408_v10, %v1244_v16 }
 0x7eb   :  { %v1768_v20 = vpop.eup %1767  ;;  %v1267_v23 = vadd.f32 %v1409_v14, %v1256_v8  ;;  %v1247_v24 = vmul.f32 %v1766_v17, %v2199_v56 }
 0x7ec   :  { %v1266_v25 = vadd.f32 %v1409_v14, %v1255_v19  ;;  %v1246_v26 = vmul.f32 %v1768_v20, %v2201_v57 }
 0x7ed   :  { %v1258_v27 = vmul.f32 %v1408_v10, %v1247_v24  ;;  %v1423_v28 = vpack.c.bf16 %v1267_v23, %v1267_v23 }
 0x7ee   :  { %v1257_v29 = vmul.f32 %v1408_v10, %v1246_v26  ;;  %v1422_v30 = vpack.c.bf16 %v1266_v25, %v1266_v25 }
 0x7ef   :  { %v1269_v31 = vadd.f32 %v1409_v14, %v1258_v27  ;;  %1287 = vst.msk [vmem:[#allocation10 + $0x4] sm:$0xf] %vm212_vm2, %v1423_v28 }
 0x7f0   :  { %v1268_v32 = vadd.f32 %v1409_v14, %v1257_v29  ;;  %1286 = vst.msk [vmem:[#allocation10] sm:$0xf] %vm212_vm2, %v1422_v30 }
 0x7f1   :  { %v1425_v33 = vpack.c.bf16 %v1269_v31, %v1269_v31 }
 0x7f2   :  { %v1424_v34 = vpack.c.bf16 %v1268_v32, %v1268_v32 }
 0x7f3   :  { %1289 = vst.msk [vmem:[#allocation10 + $0xc] sm:$0xf] %vm212_vm2, %v1425_v33 }
 0x7f4   :  { %1288 = vst.msk [vmem:[#allocation10 + $0x8] sm:$0xf] %vm212_vm2, %v1424_v34 }
 0x7f5   :  { %1868 = shalt.err (!%p1865_p8)
}
 0x7f6   :  { %s1869_s23 = scalar_lea.hbm %s2289_s15, 256 }
 0x7f7   :  { %p1870_p9 = scmp.ne.s32.totalorder %s2289_s15, %s1869_s23  ;;  %p1873_p10 = scmp.lt.u32.totalorder %s1869_s23, %s2289_s15 }
 0x7f9   :  { %p1875_p11 = pnand %p1873_p10, %p1870_p9 }
 0x7fb   :  { %1878 = shalt.err (!%p1875_p11)
}
 0x7fc   :  { %1325 = dma.vmem_to_hbm [thread:$0]  %s1320_s12, 256, %s2289_s15, [#allocation9], %s1888_s28, %s1888_s28, %s1889_s29  }
 0x7fd   :  { %1883 = dma.done.wait [#allocation4], 256  }
 0x7fe   :  { %1884 = vsyncadd [#allocation4], 4294967040 }
 0x7ff   :  { %1885 = dma.done.wait [#allocation9], 512  }
 0x800   :  { %1886 = vsyncadd [#allocation9], 4294966784 }
 0x801   :  { %1335 = vsyncpa [#allocation3], 1 }
 0x802   :  { %1336 = vsyncpa [#allocation6], 1 }
 0x803   :  { %1337 = vsyncpa [#allocation4], 1 }
 0x804   :  { %1338 = vsyncpa [#allocation9], 1 }

</bundles_post_ra>
